<compile_context>
chip_gen: v7x
topology: tpu7x:2x2x1
jax: 0.10.0
libtpu: 0.0.40
codegen_flags: <defaults>
</compile_context>

<pallas_src>
import jax
import jax.numpy as jnp
import numpy as np
from jax.experimental import pallas as pl
from jax.experimental.pallas import tpu as pltpu

LN_EPS = 1e-5


def _merge_norm_reduce_kernel(a_ref, b_ref, wa_ref, wb_ref, bias_ref, o_ref):
    """Fused 2x2 merge + LayerNorm(4C) + Linear(4C -> 2C, no bias) on a row tile.

    a_ref   : (tr, Wo, 2C)   row-even slab  -> channels [x0 | x2]
    b_ref   : (tr, Wo, 2C)   row-odd  slab  -> channels [x1 | x3]
    wa_ref  : (2C, 2Co)      gamma-folded weight rows matching slab a
    wb_ref  : (2C, 2Co)      gamma-folded weight rows matching slab b
    bias_ref: (1, 2Co)       beta @ W
    o_ref   : (tr, Wo, 2Co)  output tile
    """
    a = a_ref[...].astype(jnp.float32)
    b = b_ref[...].astype(jnp.float32)
    tr, wo, c2 = a.shape
    inv_4c = 1.0 / float(2 * c2)

    # LayerNorm statistics over the full 4C channels, computed slab-wise
    # (so the 4C concat is never materialized).
    mean = (jnp.sum(a, axis=-1, keepdims=True)
            + jnp.sum(b, axis=-1, keepdims=True)) * inv_4c
    ac = a - mean
    bc = b - mean
    var = (jnp.sum(ac * ac, axis=-1, keepdims=True)
           + jnp.sum(bc * bc, axis=-1, keepdims=True)) * inv_4c
    inv = jax.lax.rsqrt(var + LN_EPS)

    an = (ac * inv).reshape(tr * wo, c2)
    bn = (bc * inv).reshape(tr * wo, c2)

    out = jnp.dot(an, wa_ref[...].astype(jnp.float32),
                  preferred_element_type=jnp.float32)
    out = out + jnp.dot(bn, wb_ref[...].astype(jnp.float32),
                        preferred_element_type=jnp.float32)
    out = out + bias_ref[...].astype(jnp.float32)
    o_ref[...] = out.reshape(o_ref.shape).astype(o_ref.dtype)


def patch_merging_2d(x, gamma, beta, weight, *, target_tokens=2048):
    """x: [B, H, W, C] channels-last.  Returns [B, H//2, W//2, 2C]."""
    B, H, W, C = x.shape
    Ho, Wo = H // 2, W // 2
    # Crop to even spatial extents (equivalent to the module's SHAPE_FIX path).
    x = x[:, :2 * Ho, :2 * Wo, :]

    Co2 = weight.shape[1]  # 2*C output channels

    # Free view: [B*Ho, 2 (row parity), Wo, 2C]; no data movement.
    R = B * Ho
    xr = x.reshape(R, 2, Wo, 2 * C)

    # --- fold LayerNorm affine into the reduction weight (one-time, wrapper) ---
    wf32 = weight.astype(jnp.float32)
    wg = gamma.astype(jnp.float32)[:, None] * wf32
    # slab a = row-even = channels [x0 | x2]  -> W rows [0:C] ++ [2C:3C]
    wa = jnp.concatenate([wg[0:C], wg[2 * C:3 * C]], axis=0)
    # slab b = row-odd  = channels [x1 | x3]  -> W rows [C:2C] ++ [3C:4C]
    wb = jnp.concatenate([wg[C:2 * C], wg[3 * C:4 * C]], axis=0)
    bias = (beta.astype(jnp.float32) @ wf32).reshape(1, Co2)

    # --- token tiling: tr rows of (B*Ho) per grid step -> tr*Wo tokens/tile ---
    tr = max(1, min(R, target_tokens // max(Wo, 1)))
    if R >= 2:                      # keep >= 2 grid steps (v7x has 2 TensorCores)
        tr = min(tr, (R + 1) // 2)
    g = -(-R // tr)                 # number of grid steps
    tr = -(-R // g)                 # balance rows per step (minimizes padding)
    Rp = g * tr
    if Rp != R:                     # pad N up instead of shrinking the tile
        xr = jnp.pad(xr, ((0, Rp - R), (0, 0), (0, 0), (0, 0)))

    slab_block = (tr, pl.Squeezed(), Wo, 2 * C)

    out = pl.pallas_call(
        _merge_norm_reduce_kernel,
        out_shape=jax.ShapeDtypeStruct((Rp, Wo, Co2), x.dtype),
        grid_spec=pltpu.PrefetchScalarGridSpec(
            num_scalar_prefetch=0,
            grid=(g,),
            in_specs=[
                pl.BlockSpec(slab_block, lambda i: (i, 0, 0, 0)),  # row-even slab
                pl.BlockSpec(slab_block, lambda i: (i, 1, 0, 0)),  # row-odd slab
                pl.BlockSpec((2 * C, Co2), lambda i: (0, 0)),      # Wa (constant)
                pl.BlockSpec((2 * C, Co2), lambda i: (0, 0)),      # Wb (constant)
                pl.BlockSpec((1, Co2), lambda i: (0, 0)),          # bias (constant)
            ],
            out_specs=pl.BlockSpec((tr, Wo, Co2), lambda i: (i, 0, 0)),
        ),
        compiler_params=pltpu.CompilerParams(
            dimension_semantics=("parallel",),
        ),
    )(xr, xr, wa, wb, bias)

    return out[:R].reshape(B, Ho, Wo, Co2)


def _reference(x, gamma, beta, weight):
    x0 = x[:, 0::2, 0::2, :]
    x1 = x[:, 1::2, 0::2, :]
    x2 = x[:, 0::2, 1::2, :]
    x3 = x[:, 1::2, 1::2, :]
    xm = jnp.concatenate([x0, x1, x2, x3], axis=-1).astype(jnp.float32)
    mean = jnp.mean(xm, axis=-1, keepdims=True)
    var = jnp.mean((xm - mean) ** 2, axis=-1, keepdims=True)
    y = (xm - mean) / jnp.sqrt(var + LN_EPS) * gamma + beta
    return jnp.einsum("bhwk,kd->bhwd", y, weight.astype(jnp.float32))


if __name__ == "__main__":
    key = jax.random.PRNGKey(0)
    kx, kw, kg, kb = jax.random.split(key, 4)

    B, H, W, C = 2, 16, 16, 4
    x = jax.random.normal(kx, (B, H, W, C), dtype=jnp.float32)

    # nn.LayerNorm defaults are gamma=1, beta=0; perturb them so the
    # gamma/beta -> weight/bias folding is actually exercised by the check.
    gamma = 1.0 + 0.1 * jax.random.normal(kg, (4 * C,), dtype=jnp.float32)
    beta = 0.02 * jax.random.normal(kb, (4 * C,), dtype=jnp.float32)
    weight = jax.random.normal(kw, (4 * C, 2 * C), dtype=jnp.float32) * 0.02

    out = patch_merging_2d(x, gamma, beta, weight)
    out = jax.block_until_ready(out)

    ref = _reference(x, gamma, beta, weight)
    np.testing.assert_allclose(np.asarray(out), np.asarray(ref), rtol=1e-5, atol=1e-5)

    assert out.shape == (B, H // 2, W // 2, 2 * C)
    print("KERNEL_OK")
</pallas_src>

<mosaic_0001>
module attributes {stable_mosaic.version = 11 : i64} {
  func.func @_merge_norm_reduce_kernel(%arg0: i32, %arg1: memref<8x1x8x8xf32, #tpu.memory_space<vmem>>, %arg2: memref<8x1x8x8xf32, #tpu.memory_space<vmem>>, %arg3: memref<8x8xf32, #tpu.memory_space<vmem>>, %arg4: memref<8x8xf32, #tpu.memory_space<vmem>>, %arg5: memref<1x8xf32, #tpu.memory_space<vmem>>, %arg6: memref<8x8x8xf32, #tpu.memory_space<vmem>>) attributes {dimension_semantics = [#tpu.dimension_semantics<parallel>], iteration_bounds = array<i64: 2>, scalar_prefetch = 0 : i64, scratch_operands = 0 : i64, tpu.core_type = #tpu.core_type<tc>, window_params = [{transform_indices = @transform_0, window_bounds = array<i64: 8, 1, 8, 8>}, {transform_indices = @transform_1, window_bounds = array<i64: 8, 1, 8, 8>}, {pipeline_mode = #tpu.pipeline_mode<synchronous>, transform_indices = @transform_2, window_bounds = array<i64: 8, 8>}, {pipeline_mode = #tpu.pipeline_mode<synchronous>, transform_indices = @transform_3, window_bounds = array<i64: 8, 8>}, {pipeline_mode = #tpu.pipeline_mode<synchronous>, transform_indices = @transform_4, window_bounds = array<i64: 1, 8>}, {transform_indices = @transform_5, window_bounds = array<i64: 8, 8, 8>}]} {
    %c0 = arith.constant 0 : index
    %c0_0 = arith.constant 0 : index
    %c0_1 = arith.constant 0 : index
    %c0_2 = arith.constant 0 : index
    %0 = vector.load %arg1[%c0, %c0_0, %c0_1, %c0_2] : memref<8x1x8x8xf32, #tpu.memory_space<vmem>>, vector<8x1x8x8xf32>
    %1 = vector.shape_cast %0 : vector<8x1x8x8xf32> to vector<8x8x8xf32>
    %c0_3 = arith.constant 0 : index
    %c0_4 = arith.constant 0 : index
    %c0_5 = arith.constant 0 : index
    %c0_6 = arith.constant 0 : index
    %2 = vector.load %arg2[%c0_3, %c0_4, %c0_5, %c0_6] : memref<8x1x8x8xf32, #tpu.memory_space<vmem>>, vector<8x1x8x8xf32>
    %3 = vector.shape_cast %2 : vector<8x1x8x8xf32> to vector<8x8x8xf32>
    %cst = arith.constant dense<0.000000e+00> : vector<8x8xf32>
    %4 = vector.multi_reduction <add>, %1, %cst [2] : vector<8x8x8xf32> to vector<8x8xf32>
    %5 = vector.shape_cast %4 : vector<8x8xf32> to vector<8x8x1xf32>
    %cst_7 = arith.constant dense<0.000000e+00> : vector<8x8xf32>
    %6 = vector.multi_reduction <add>, %3, %cst_7 [2] : vector<8x8x8xf32> to vector<8x8xf32>
    %7 = vector.shape_cast %6 : vector<8x8xf32> to vector<8x8x1xf32>
    %8 = arith.addf %5, %7 : vector<8x8x1xf32>
    %cst_8 = arith.constant 6.250000e-02 : f32
    %9 = vector.broadcast %cst_8 : f32 to vector<8x8x1xf32>
    %10 = arith.mulf %8, %9 : vector<8x8x1xf32>
    %11 = vector.broadcast %10 : vector<8x8x1xf32> to vector<8x8x8xf32>
    %12 = arith.subf %1, %11 : vector<8x8x8xf32>
    %13 = vector.broadcast %10 : vector<8x8x1xf32> to vector<8x8x8xf32>
    %14 = arith.subf %3, %13 : vector<8x8x8xf32>
    %15 = arith.mulf %12, %12 : vector<8x8x8xf32>
    %cst_9 = arith.constant dense<0.000000e+00> : vector<8x8xf32>
    %16 = vector.multi_reduction <add>, %15, %cst_9 [2] : vector<8x8x8xf32> to vector<8x8xf32>
    %17 = vector.shape_cast %16 : vector<8x8xf32> to vector<8x8x1xf32>
    %18 = arith.mulf %14, %14 : vector<8x8x8xf32>
    %cst_10 = arith.constant dense<0.000000e+00> : vector<8x8xf32>
    %19 = vector.multi_reduction <add>, %18, %cst_10 [2] : vector<8x8x8xf32> to vector<8x8xf32>
    %20 = vector.shape_cast %19 : vector<8x8xf32> to vector<8x8x1xf32>
    %21 = arith.addf %17, %20 : vector<8x8x1xf32>
    %cst_11 = arith.constant 6.250000e-02 : f32
    %22 = vector.broadcast %cst_11 : f32 to vector<8x8x1xf32>
    %23 = arith.mulf %21, %22 : vector<8x8x1xf32>
    %cst_12 = arith.constant 9.99999974E-6 : f32
    %24 = vector.broadcast %cst_12 : f32 to vector<8x8x1xf32>
    %25 = arith.addf %23, %24 : vector<8x8x1xf32>
    %26 = math.rsqrt %25 : vector<8x8x1xf32>
    %27 = vector.broadcast %26 : vector<8x8x1xf32> to vector<8x8x8xf32>
    %28 = arith.mulf %12, %27 : vector<8x8x8xf32>
    %29 = vector.shape_cast %28 : vector<8x8x8xf32> to vector<64x8xf32>
    %30 = vector.broadcast %26 : vector<8x8x1xf32> to vector<8x8x8xf32>
    %31 = arith.mulf %14, %30 : vector<8x8x8xf32>
    %32 = vector.shape_cast %31 : vector<8x8x8xf32> to vector<64x8xf32>
    %c0_13 = arith.constant 0 : index
    %c0_14 = arith.constant 0 : index
    %33 = vector.load %arg3[%c0_13, %c0_14] : memref<8x8xf32, #tpu.memory_space<vmem>>, vector<8x8xf32>
    %cst_15 = arith.constant dense<0.000000e+00> : vector<64x8xf32>
    %34 = tpu.matmul %29, %33, %cst_15 {dimension_numbers = #tpu.dot_dimension_numbers<[1], [0], [0], [1], [0, 0, 1, 1], [], []>} : vector<64x8xf32>, vector<8x8xf32>, vector<64x8xf32> -> vector<64x8xf32>
    %c0_16 = arith.constant 0 : index
    %c0_17 = arith.constant 0 : index
    %35 = vector.load %arg4[%c0_16, %c0_17] : memref<8x8xf32, #tpu.memory_space<vmem>>, vector<8x8xf32>
    %cst_18 = arith.constant dense<0.000000e+00> : vector<64x8xf32>
    %36 = tpu.matmul %32, %35, %cst_18 {dimension_numbers = #tpu.dot_dimension_numbers<[1], [0], [0], [1], [0, 0, 1, 1], [], []>} : vector<64x8xf32>, vector<8x8xf32>, vector<64x8xf32> -> vector<64x8xf32>
    %37 = arith.addf %34, %36 : vector<64x8xf32>
    %c0_19 = arith.constant 0 : index
    %c0_20 = arith.constant 0 : index
    %38 = vector.load %arg5[%c0_19, %c0_20] : memref<1x8xf32, #tpu.memory_space<vmem>>, vector<1x8xf32>
    %39 = vector.broadcast %38 : vector<1x8xf32> to vector<64x8xf32>
    %40 = arith.addf %37, %39 : vector<64x8xf32>
    %41 = vector.shape_cast %40 : vector<64x8xf32> to vector<8x8x8xf32>
    %c0_21 = arith.constant 0 : index
    %c0_22 = arith.constant 0 : index
    %c0_23 = arith.constant 0 : index
    %42 = vector.load %arg6[%c0_21, %c0_22, %c0_23] : memref<8x8x8xf32, #tpu.memory_space<vmem>>, vector<8x8x8xf32>
    tpu.vector_store %arg6[%c0_21, %c0_22, %c0_23], %41 {strides = array<i32>} : memref<8x8x8xf32, #tpu.memory_space<vmem>>, vector<8x8x8xf32>,
    return
  }
  func.func @transform_0(%arg0: i32) -> (i32, i32, i32, i32) {
    %c0_i32 = arith.constant 0 : i32
    %c0_i32_0 = arith.constant 0 : i32
    %c0_i32_1 = arith.constant 0 : i32
    %c0_i32_2 = arith.constant 0 : i32
    return %arg0, %c0_i32, %c0_i32_0, %c0_i32_1 : i32, i32, i32, i32
  }
  func.func @transform_1(%arg0: i32) -> (i32, i32, i32, i32) {
    %c1_i32 = arith.constant 1 : i32
    %c0_i32 = arith.constant 0 : i32
    %c0_i32_0 = arith.constant 0 : i32
    %c0_i32_1 = arith.constant 0 : i32
    return %arg0, %c1_i32, %c0_i32, %c0_i32_0 : i32, i32, i32, i32
  }
  func.func @transform_2(%arg0: i32) -> (i32, i32) {
    %c0_i32 = arith.constant 0 : i32
    %c0_i32_0 = arith.constant 0 : i32
    %c0_i32_1 = arith.constant 0 : i32
    return %c0_i32, %c0_i32_0 : i32, i32
  }
  func.func @transform_3(%arg0: i32) -> (i32, i32) {
    %c0_i32 = arith.constant 0 : i32
    %c0_i32_0 = arith.constant 0 : i32
    %c0_i32_1 = arith.constant 0 : i32
    return %c0_i32, %c0_i32_0 : i32, i32
  }
  func.func @transform_4(%arg0: i32) -> (i32, i32) {
    %c0_i32 = arith.constant 0 : i32
    %c0_i32_0 = arith.constant 0 : i32
    %c0_i32_1 = arith.constant 0 : i32
    return %c0_i32, %c0_i32_0 : i32, i32
  }
  func.func @transform_5(%arg0: i32) -> (i32, i32, i32) {
    %c0_i32 = arith.constant 0 : i32
    %c0_i32_0 = arith.constant 0 : i32
    %c0_i32_1 = arith.constant 0 : i32
    return %arg0, %c0_i32, %c0_i32_0 : i32, i32, i32
  }
}

</mosaic_0001>

<bundles_post_ra>
// kernel: tpu_custom_call.1
= control target key start
LH: loop header
LB: loop body
LE: loop exit
PB: predicated region body
PF: predicated region fallthrough
CT: control target
= control target key end

     0   :  { %s1145_s18 = smov 0   ;;  %s1147_s19 = smov 0   ;;  %s1429_s0 = inlined_call_operand.vmem [shape: f32[16,2,8,8], index: 0, kind: input, shape index: {}]   ;;  %s1430_s1 = inlined_call_operand.vmem [shape: f32[16,2,8,8], index: 1, kind: input, shape index: {}]   ;;  %s1431_s2 = inlined_call_operand.vmem [shape: f32[8,8], index: 2, kind: input, shape index: {}]   ;;  %s1432_s3 = inlined_call_operand.vmem [shape: f32[8,8], index: 3, kind: input, shape index: {}]   ;;  %s1433_s4 = inlined_call_operand.vmem [shape: f32[1,8], index: 4, kind: input, shape index: {}]   ;;  %s1434_s5 = inlined_call_operand.vmem [shape: f32[16,8,8], index: 5, kind: output, shape index: {}]  }
   0x1   :  { %s1149_s20 = smov 0  }
   0x2 LB: > { %s951_s21 = sadd.s32 4294967295, %s1113_s20   ;;  %s1162_s22 = sadd.s32 1, %s1113_s20   ;;  %s1113_s20 = sphi %s1149_s20, %s1438_s20   ;;  %s1109_s19 = sphi %s1147_s19, %s1437_s19   ;;  %s1105_s18 = sphi %s1145_s18, %s1436_s18  }
   0x3   : > { %s19_s23 = ssub.s32 %s1113_s20, %s1162_s22  ;;  %s22_s24 = sadd.s32 1, %s1109_s19 }
   0x4   : > { %p20_p0 = scmp.eq.s32.totalorder %s19_s23, 0  ;;  %p29_p1 = scmp.ne.s32.totalorder %s1109_s19, %s1105_s18 }
   0x5   : > { %p30_p2 = scmp.eq.s32.totalorder %s1113_s20, 0  ;;  %p954_p4 = scmp.ge.s32.totalorder %s1113_s20, 2 }
   0x6   : > { %s1171_s25 = scalar_select %p20_p0, %s1109_s19, %s22_s24  }
   0x7   : > { %p1173_p3 = por %p30_p2, %p29_p1  ;;  %179 = sbr.rel (%p954_p4) target bundleno = 30 (0x1e), region = 28 }
   0xe   : > { %182 = sbr.rel (!%p1173_p3) target bundleno = 22 (0x16), region = 32  ;;  %s184_s27 = sand.u32 (%p1173_p3), 1, %s1109_s19  }
   0xf   : > { %s995_s28 = sshll.u32 (%p1173_p3), %s1113_s20, 7  ;;  %s955_s29 = sshll.u32 (%p1173_p3), %s184_s27, 6 }
  0x10   : > { %s190_s7 = scalar_lea.vmem (%p1173_p3), %s1429_s0, %s995_s28  ;;  %s186_s8 = scalar_lea.vmem (%p1173_p3), [#allocation2], %s955_s29 }
  0x11   : > { %v232_v0 = vld [vmem:[%s190_s7] sm:$0xff] (%p1173_p3)  ;;  %v234_v1 = vld [vmem:[%s190_s7 + $0x10] sm:$0xff] (%p1173_p3) }
  0x12   : > { %v236_v2 = vld [vmem:[%s190_s7 + $0x20] sm:$0xff] (%p1173_p3)  ;;  %233 = vst [vmem:[%s186_s8] sm:$0xff] (%p1173_p3), %v232_v0  ;;  %235 = vst [vmem:[%s186_s8 + $0x8] sm:$0xff] (%p1173_p3), %v234_v1  ;;  %v238_v3 = vld [vmem:[%s190_s7 + $0x30] sm:$0xff] (%p1173_p3) }
  0x13   : > { %237 = vst [vmem:[%s186_s8 + $0x10] sm:$0xff] (%p1173_p3), %v236_v2  ;;  %v240_v4 = vld [vmem:[%s190_s7 + $0x40] sm:$0xff] (%p1173_p3)  ;;  %v242_v5 = vld [vmem:[%s190_s7 + $0x50] sm:$0xff] (%p1173_p3)  ;;  %239 = vst [vmem:[%s186_s8 + $0x18] sm:$0xff] (%p1173_p3), %v238_v3 }
  0x14   : > { %241 = vst [vmem:[%s186_s8 + $0x20] sm:$0xff] (%p1173_p3), %v240_v4  ;;  %243 = vst [vmem:[%s186_s8 + $0x28] sm:$0xff] (%p1173_p3), %v242_v5  ;;  %v244_v6 = vld [vmem:[%s190_s7 + $0x60] sm:$0xff] (%p1173_p3)  ;;  %v246_v7 = vld [vmem:[%s190_s7 + $0x70] sm:$0xff] (%p1173_p3) }
  0x15   : > { %245 = vst [vmem:[%s186_s8 + $0x30] sm:$0xff] %v244_v6  ;;  %247 = vst [vmem:[%s186_s8 + $0x38] sm:$0xff] %v246_v7 }
  0x16 PF: > { %253 = sbr.rel (!%p1173_p3) target bundleno = 30 (0x1e), region = 70  ;;  %s255_s9 = sand.u32 (%p1173_p3), 1, %s1109_s19  }
  0x17   : > { %s996_s10 = sshll.u32 (%p1173_p3), %s1113_s20, 7  ;;  %s959_s11 = sshll.u32 (%p1173_p3), %s255_s9, 6 }
  0x18   : > { %s899_s14 = scalar_lea.vmem (%p1173_p3), %s1430_s1, %s996_s10  ;;  %s257_s15 = scalar_lea.vmem (%p1173_p3), [#allocation3], %s959_s11 }
  0x19   : > { %v962_v8 = vld [vmem:[%s899_s14 + $0x8] sm:$0xff] (%p1173_p3)  ;;  %v963_v9 = vld [vmem:[%s899_s14 + $0x18] sm:$0xff] (%p1173_p3) }
  0x1a   : > { %v964_v10 = vld [vmem:[%s899_s14 + $0x28] sm:$0xff] (%p1173_p3)  ;;  %305 = vst [vmem:[%s257_s15] sm:$0xff] (%p1173_p3), %v962_v8  ;;  %307 = vst [vmem:[%s257_s15 + $0x8] sm:$0xff] (%p1173_p3), %v963_v9  ;;  %v965_v11 = vld [vmem:[%s899_s14 + $0x38] sm:$0xff] (%p1173_p3) }
  0x1b   : > { %309 = vst [vmem:[%s257_s15 + $0x10] sm:$0xff] (%p1173_p3), %v964_v10  ;;  %v966_v12 = vld [vmem:[%s899_s14 + $0x48] sm:$0xff] (%p1173_p3)  ;;  %v967_v13 = vld [vmem:[%s899_s14 + $0x58] sm:$0xff] (%p1173_p3)  ;;  %311 = vst [vmem:[%s257_s15 + $0x18] sm:$0xff] (%p1173_p3), %v965_v11 }
  0x1c   : > { %313 = vst [vmem:[%s257_s15 + $0x20] sm:$0xff] (%p1173_p3), %v966_v12  ;;  %315 = vst [vmem:[%s257_s15 + $0x28] sm:$0xff] (%p1173_p3), %v967_v13  ;;  %v968_v14 = vld [vmem:[%s899_s14 + $0x68] sm:$0xff] (%p1173_p3)  ;;  %v969_v15 = vld [vmem:[%s899_s14 + $0x78] sm:$0xff] (%p1173_p3) }
  0x1d   : > { %317 = vst [vmem:[%s257_s15 + $0x30] sm:$0xff] %v968_v14  ;;  %319 = vst [vmem:[%s257_s15 + $0x38] sm:$0xff] %v969_v15 }
  0x1e PF: > { %p970_p5 = scmp.ge.s32.totalorder %s1113_s20, 1  ;;  %p324_p6 = scmp.lt.s32.totalorder %s1113_s20, 3 }
  0x20   : > { %p325_p7 = pnand %p970_p5, %p324_p6 }
  0x21   : > { %s331_s16 = sand.u32 (!%p325_p7), 1, %s1105_s18   ;;  %vm393_vm0 = vcmask (!%p325_p7), 64512   ;;  %s973_s29 = sshll.u32 (!%p325_p7), %s951_s21, 3 }
  0x22   : > { %328 = sbr.rel (%p325_p7) target bundleno = 600 (0x258), region = 108  ;;  %s971_s17 = sshll.u32 (!%p325_p7), %s331_s16, 6 }
  0x23   : > { %s1195_s23 = scalar_lea.vmem (!%p325_p7), [#allocation2], %s971_s17  ;;  %s1199_s24 = scalar_lea.vmem (!%p325_p7), [#allocation3], %s971_s17 }
  0x24   : > { %v378_v16 = vld [vmem:[%s1195_s23 + $0x8] sm:$0xff] (!%p325_p7)  ;;  %v377_v17 = vld [vmem:[%s1195_s23] sm:$0xff] (!%p325_p7)  ;;  %v1208_v24 = vld [vmem:[%s1199_s24 + $0x10] sm:$0xff] (!%p325_p7)  ;;  %p372_p8 = scmp.lt.s32.totalorder (!%p325_p7), %s973_s29, 15 }
  0x25   : > { %v386_v18 = vld [vmem:[%s1199_s24 + $0x8] sm:$0xff] (!%p325_p7)  ;;  %v397_v19 = vsel (!%p325_p7), %vm393_vm0, %v378_v16, 0.0  ;;  %v394_v20 = vsel (!%p325_p7), %vm393_vm0, %v377_v17, 0.0  ;;  %v385_v21 = vld [vmem:[%s1199_s24] sm:$0xff] (!%p325_p7)  ;;  %v379_v25 = vld [vmem:[%s1195_s23 + $0x10] sm:$0xff] (!%p325_p7)  ;;  %v424_v26 = vsel (!%p325_p7), %vm393_vm0, %v1208_v24, 0.0 }
  0x26   : > { %398 = vadd.xlane.f32.xlu1 (!%p325_p7), %v397_v19  ;;  %395 = vadd.xlane.f32.xlu0 (!%p325_p7), %v394_v20  ;;  %v421_v22 = vsel (!%p325_p7), %vm393_vm0, %v386_v18, 0.0  ;;  %v418_v23 = vsel (!%p325_p7), %vm393_vm0, %v385_v21, 0.0  ;;  %v400_v27 = vsel (!%p325_p7), %vm393_vm0, %v379_v25, 0.0  ;;  %v1215_v28 = vld [vmem:[%s1199_s24 + $0x18] sm:$0xff] (!%p325_p7)  ;;  %v1225_v32 = vld [vmem:[%s1199_s24 + $0x20] sm:$0xff] (!%p325_p7)  ;;  %v1235_v36 = vld [vmem:[%s1199_s24 + $0x28] sm:$0xff] (!%p325_p7) }
  0x27   : > { %v1218_v29 = vld [vmem:[%s1195_s23 + $0x18] sm:$0xff] (!%p325_p7)  ;;  %v427_v30 = vsel (!%p325_p7), %vm393_vm0, %v1215_v28, 0.0  ;;  %v1228_v33 = vld [vmem:[%s1195_s23 + $0x20] sm:$0xff] (!%p325_p7)  ;;  %v430_v34 = vsel (!%p325_p7), %vm393_vm0, %v1225_v32, 0.0  ;;  %v1238_v37 = vld [vmem:[%s1195_s23 + $0x28] sm:$0xff] (!%p325_p7)  ;;  %v433_v38 = vsel (!%p325_p7), %vm393_vm0, %v1235_v36, 0.0 }
  0x28   : > { %v403_v31 = vsel (!%p325_p7), %vm393_vm0, %v1218_v29, 0.0  ;;  %v406_v35 = vsel (!%p325_p7), %vm393_vm0, %v1228_v33, 0.0  ;;  %v409_v39 = vsel (!%p325_p7), %vm393_vm0, %v1238_v37, 0.0  ;;  %v1245_v40 = vld [vmem:[%s1199_s24 + $0x30] sm:$0xff] (!%p325_p7)  ;;  %v1255_v44 = vld [vmem:[%s1199_s24 + $0x38] sm:$0xff] (!%p325_p7) }
  0x29   : > { %v1248_v41 = vld [vmem:[%s1195_s23 + $0x30] sm:$0xff]  ;;  %v436_v42 = vsel %vm393_vm0, %v1245_v40, 0.0  ;;  %v1258_v45 = vld [vmem:[%s1195_s23 + $0x38] sm:$0xff]  ;;  %v439_v46 = vsel %vm393_vm0, %v1255_v44, 0.0  ;;  %s1440_s29 = smov (!%p372_p8, %s973_s29), 15 }
  0x2a   : > { %422 = vadd.xlane.f32.xlu1 %v421_v22  ;;  %419 = vadd.xlane.f32.xlu0 %v418_v23  ;;  %v412_v43 = vsel %vm393_vm0, %v1248_v41, 0.0  ;;  %v415_v47 = vsel %vm393_vm0, %v1258_v45, 0.0  ;;  %s974_s30 = sshll.u32 %s1440_s29, 3 }
  0x2b   : > { %s1401_s10 = scalar_lea.vmem %s1434_s5, %s974_s30 }
  0x2e   : > { %425 = vadd.xlane.f32.xlu1 %v424_v26  ;;  %401 = vadd.xlane.f32.xlu0 %v400_v27 }
  0x32   : > { %428 = vadd.xlane.f32.xlu1 %v427_v30  ;;  %404 = vadd.xlane.f32.xlu0 %v403_v31 }
  0x36   : > { %431 = vadd.xlane.f32.xlu1 %v430_v34  ;;  %407 = vadd.xlane.f32.xlu0 %v406_v35 }
  0x3a   : > { %434 = vadd.xlane.f32.xlu1 %v433_v38  ;;  %410 = vadd.xlane.f32.xlu0 %v409_v39 }
  0x3e   : > { %437 = vadd.xlane.f32.xlu1 %v436_v42  ;;  %413 = vadd.xlane.f32.xlu0 %v412_v43 }
  0x42   : > { %440 = vadd.xlane.f32.xlu1 %v439_v46  ;;  %416 = vadd.xlane.f32.xlu0 %v415_v47 }
  0xb3   : > { %v399_v48 = vpop.xlane.xlu1 %398  ;;  %v396_v49 = vpop.xlane.xlu0 %395 }
  0xb7   : > { %v423_v50 = vpop.xlane.xlu1 %422  ;;  %v420_v51 = vpop.xlane.xlu0 %419 }
  0xb8   : > { %v443_v52 = vadd.f32 %v423_v50, %v399_v48  ;;  %v442_v53 = vadd.f32 %v420_v51, %v396_v49 }
  0xba   : > { %v451_v54 = vmul.f32 0.0625, %v443_v52  ;;  %v450_v55 = vmul.f32 0.0625, %v442_v53 }
  0xbb   : > { %v426_v56 = vpop.xlane.xlu1 %425  ;;  %v402_v57 = vpop.xlane.xlu0 %401 }
  0xbc   : > { %v1264_v58 = vsub.f32 %v378_v16, %v451_v54  ;;  %v1266_v59 = vsub.f32 %v386_v18, %v451_v54  ;;  %v1268_v60 = vsub.f32 %v377_v17, %v450_v55  ;;  %v1270_v61 = vsub.f32 %v385_v21, %v450_v55 }
  0xbd   : > { %v444_v62 = vadd.f32 %v426_v56, %v402_v57 }
  0xbe   : > { %v506_v63 = vmul.f32 %v1270_v61, %v1270_v61  ;;  %v474_v0 = vmul.f32 %v1268_v60, %v1268_v60  ;;  %v507_v4 = vmul.f32 %v1266_v59, %v1266_v59  ;;  %v475_v8 = vmul.f32 %v1264_v58, %v1264_v58 }
  0xbf   : > { %v452_v1 = vmul.f32 0.0625, %v444_v62  ;;  %v429_v2 = vpop.xlane.xlu1 %428  ;;  %v405_v3 = vpop.xlane.xlu0 %404 }
  0xc0   : > { %v514_v5 = vsel %vm393_vm0, %v506_v63, 0.0  ;;  %v482_v6 = vsel %vm393_vm0, %v474_v0, 0.0  ;;  %v445_v7 = vadd.f32 %v429_v2, %v405_v3  ;;  %v517_v12 = vsel %vm393_vm0, %v507_v4, 0.0 }
  0xc1   : > { %v1282_v9 = vsub.f32 %v379_v25, %v452_v1  ;;  %v1285_v10 = vsub.f32 %v1208_v24, %v452_v1  ;;  %515 = vadd.xlane.f32.xlu1 %v514_v5  ;;  %483 = vadd.xlane.f32.xlu0 %v482_v6  ;;  %v485_v19 = vsel %vm393_vm0, %v475_v8, 0.0  ;;  %v586_v5 = vld [vmem:[%s1431_s2] sm:$0xff] }
  0xc2   : > { %v453_v11 = vmul.f32 0.0625, %v445_v7  ;;  %1029 = vmatprep.subr.mxu0 %v586_v5 }
  0xc3   : > { %v432_v13 = vpop.xlane.xlu1 %431  ;;  %v408_v14 = vpop.xlane.xlu0 %407  ;;  %v508_v15 = vmul.f32 %v1285_v10, %v1285_v10  ;;  %v476_v16 = vmul.f32 %v1282_v9, %v1282_v9  ;;  %1030 = vmatpush3.msra.mxu0 %v586_v5 }
  0xc4   : > { %v1293_v17 = vsub.f32 %v1218_v29, %v453_v11  ;;  %v1296_v18 = vsub.f32 %v1215_v28, %v453_v11  ;;  %v446_v20 = vadd.f32 %v432_v13, %v408_v14 }
  0xc5   : > { %518 = vadd.xlane.f32.xlu1 %v517_v12  ;;  %486 = vadd.xlane.f32.xlu0 %v485_v19  ;;  %v520_v21 = vsel %vm393_vm0, %v508_v15, 0.0  ;;  %v488_v23 = vsel %vm393_vm0, %v476_v16, 0.0 }
  0xc6   : > { %v454_v22 = vmul.f32 0.0625, %v446_v20  ;;  %v509_v24 = vmul.f32 %v1296_v18, %v1296_v18  ;;  %v477_v25 = vmul.f32 %v1293_v17, %v1293_v17 }
  0xc7   : > { %v435_v26 = vpop.xlane.xlu1 %434  ;;  %v411_v27 = vpop.xlane.xlu0 %410 }
  0xc8   : > { %v1306_v28 = vsub.f32 %v1228_v33, %v454_v22  ;;  %v1309_v29 = vsub.f32 %v1225_v32, %v454_v22  ;;  %v447_v30 = vadd.f32 %v435_v26, %v411_v27  ;;  %v523_v31 = vsel %vm393_vm0, %v509_v24, 0.0 }
  0xc9   : > { %521 = vadd.xlane.f32.xlu1 %v520_v21  ;;  %489 = vadd.xlane.f32.xlu0 %v488_v23  ;;  %v491_v35 = vsel %vm393_vm0, %v477_v25, 0.0 }
  0xca   : > { %v455_v34 = vmul.f32 0.0625, %v447_v30  ;;  %v510_v38 = vmul.f32 %v1309_v29, %v1309_v29  ;;  %v478_v39 = vmul.f32 %v1306_v28, %v1306_v28 }
  0xcb   : > { %v438_v42 = vpop.xlane.xlu1 %437  ;;  %v414_v33 = vpop.xlane.xlu0 %413 }
  0xcc   : > { %v1318_v43 = vsub.f32 %v1238_v37, %v455_v34  ;;  %v1321_v32 = vsub.f32 %v1235_v36, %v455_v34  ;;  %v448_v46 = vadd.f32 %v438_v42, %v414_v33  ;;  %v526_v47 = vsel %vm393_vm0, %v510_v38, 0.0 }
  0xcd   : > { %524 = vadd.xlane.f32.xlu1 %v523_v31  ;;  %492 = vadd.xlane.f32.xlu0 %v491_v35  ;;  %v494_v49 = vsel %vm393_vm0, %v478_v39, 0.0 }
  0xce   : > { %v456_v48 = vmul.f32 0.0625, %v448_v46  ;;  %v511_v50 = vmul.f32 %v1321_v32, %v1321_v32  ;;  %v479_v51 = vmul.f32 %v1318_v43, %v1318_v43 }
  0xcf   : > { %v441_v52 = vpop.xlane.xlu1 %440  ;;  %v417_v37 = vpop.xlane.xlu0 %416 }
  0xd0   : > { %v1330_v53 = vsub.f32 %v1248_v41, %v456_v48  ;;  %v1333_v36 = vsub.f32 %v1245_v40, %v456_v48  ;;  %v449_v54 = vadd.f32 %v441_v52, %v417_v37  ;;  %v529_v55 = vsel %vm393_vm0, %v511_v50, 0.0 }
  0xd1   : > { %527 = vadd.xlane.f32.xlu1 %v526_v47  ;;  %495 = vadd.xlane.f32.xlu0 %v494_v49  ;;  %v497_v57 = vsel %vm393_vm0, %v479_v51, 0.0 }
  0xd2   : > { %v457_v56 = vmul.f32 0.0625, %v449_v54  ;;  %v512_v62 = vmul.f32 %v1333_v36, %v1333_v36  ;;  %v480_v63 = vmul.f32 %v1330_v53, %v1330_v53 }
  0xd4   : > { %v1342_v41 = vsub.f32 %v1258_v45, %v457_v56  ;;  %v1345_v40 = vsub.f32 %v1255_v44, %v457_v56  ;;  %v532_v0 = vsel %vm393_vm0, %v512_v62, 0.0  ;;  %v500_v1 = vsel %vm393_vm0, %v480_v63, 0.0  ;;  %v587_v44 = vld [vmem:[%s1432_s3] sm:$0xff] }
  0xd5   : > { %530 = vadd.xlane.f32.xlu1 %v529_v55  ;;  %498 = vadd.xlane.f32.xlu0 %v497_v57 }
  0xd6   : > { %v513_v2 = vmul.f32 %v1345_v40, %v1345_v40  ;;  %v481_v3 = vmul.f32 %v1342_v41, %v1342_v41  ;;  %1015 = vmatprep.subr.mxu1 %v587_v44 }
  0xd7   : > { %1016 = vmatpush3.msra.mxu1 %v587_v44 }
  0xd8   : > { %v535_v45 = vsel %vm393_vm0, %v513_v2, 0.0  ;;  %v503_v4 = vsel %vm393_vm0, %v481_v3, 0.0 }
  0xd9   : > { %533 = vadd.xlane.f32.xlu1 %v532_v0  ;;  %501 = vadd.xlane.f32.xlu0 %v500_v1 }
  0xdd   : > { %536 = vadd.xlane.f32.xlu1 %v535_v45  ;;  %504 = vadd.xlane.f32.xlu0 %v503_v4 }
 0x14e   : > { %v516_v6 = vpop.xlane.xlu1 %515  ;;  %v484_v7 = vpop.xlane.xlu0 %483 }
 0x14f   : > { %v538_v8 = vadd.f32 %v516_v6, %v484_v7 }
 0x151   : > { %v546_v11 = vmul.f32 0.0625, %v538_v8 }
 0x152   : > { %v519_v12 = vpop.xlane.xlu1 %518  ;;  %v487_v13 = vpop.xlane.xlu0 %486 }
 0x153   : > { %v554_v14 = vadd.f32 1e-05, %v546_v11  ;;  %v539_v15 = vadd.f32 %v519_v12, %v487_v13 }
 0x155   : > { %1075 = vrsqrt.f32 %v554_v14  ;;  %v547_v16 = vmul.f32 0.0625, %v539_v15 }
 0x156   : > { %v522_v19 = vpop.xlane.xlu1 %521  ;;  %v490_v20 = vpop.xlane.xlu0 %489 }
 0x157   : > { %v555_v21 = vadd.f32 1e-05, %v547_v16  ;;  %v540_v22 = vadd.f32 %v522_v19, %v490_v20 }
 0x159   : > { %1077 = vrsqrt.f32 %v555_v21  ;;  %v548_v23 = vmul.f32 0.0625, %v540_v22 }
 0x15a   : > { %v525_v24 = vpop.xlane.xlu1 %524  ;;  %v493_v25 = vpop.xlane.xlu0 %492 }
 0x15b   : > { %v556_v26 = vadd.f32 1e-05, %v548_v23  ;;  %v541_v27 = vadd.f32 %v525_v24, %v493_v25 }
 0x15d   : > { %1079 = vrsqrt.f32 %v556_v26  ;;  %v549_v30 = vmul.f32 0.0625, %v541_v27 }
 0x15e   : > { %v528_v31 = vpop.xlane.xlu1 %527  ;;  %v496_v34 = vpop.xlane.xlu0 %495 }
 0x15f   : > { %v1076_v35 = vpop.eup %1075  ;;  %v557_v38 = vadd.f32 1e-05, %v549_v30  ;;  %v542_v39 = vadd.f32 %v528_v31, %v496_v34 }
 0x160   : > { %v578_v42 = vmul.f32 %v1076_v35, %v1270_v61  ;;  %v570_v33 = vmul.f32 %v1076_v35, %v1268_v60 }
 0x161   : > { %1081 = vrsqrt.f32 %v557_v38  ;;  %v550_v46 = vmul.f32 0.0625, %v542_v39 }
 0x162   : > { %v531_v47 = vpop.xlane.xlu1 %530  ;;  %1017 = vmatprep.mubr.msk.f32.mxu1 %vm393_vm0, %v578_v42  ;;  %1031 = vmatprep.mubr.msk.f32.mxu0 %vm393_vm0, %v570_v33  ;;  %v499_v48 = vpop.xlane.xlu0 %498 }
 0x163   : > { %v1078_v49 = vpop.eup %1077  ;;  %v558_v50 = vadd.f32 1e-05, %v550_v46  ;;  %v543_v51 = vadd.f32 %v531_v47, %v499_v48 }
 0x164   : > { %v579_v52 = vmul.f32 %v1078_v49, %v1266_v59  ;;  %v571_v37 = vmul.f32 %v1078_v49, %v1264_v58 }
 0x165   : > { %1083 = vrsqrt.f32 %v558_v50  ;;  %v551_v54 = vmul.f32 0.0625, %v543_v51 }
 0x166   : > { %v534_v61 = vpop.xlane.xlu1 %533  ;;  %1018 = vmatmul.mubr.msk.f32.vlgmr.msra.gmra.mrb[0].mxu1 %vm393_vm0, %v579_v52  ;;  %1032 = vmatmul.mubr.msk.f32.vlgmr.msra.gmra.mrb[0].mxu0 %vm393_vm0, %v571_v37  ;;  %v502_v60 = vpop.xlane.xlu0 %501 }
 0x167   : > { %v1080_v55 = vpop.eup %1079  ;;  %v559_v56 = vadd.f32 1e-05, %v551_v54  ;;  %v544_v57 = vadd.f32 %v534_v61, %v502_v60 }
 0x168   : > { %v580_v62 = vmul.f32 %v1080_v55, %v1285_v10  ;;  %v572_v63 = vmul.f32 %v1080_v55, %v1282_v9 }
 0x169   : > { %1085 = vrsqrt.f32 %v559_v56  ;;  %v552_v0 = vmul.f32 0.0625, %v544_v57 }
 0x16a   : > { %v537_v59 = vpop.xlane.xlu1 %536  ;;  %1020 = vmatprep.mubr.msk.f32.mxu1 %vm393_vm0, %v580_v62  ;;  %1034 = vmatprep.mubr.msk.f32.mxu0 %vm393_vm0, %v572_v63  ;;  %v505_v58 = vpop.xlane.xlu0 %504 }
 0x16b   : > { %v1082_v1 = vpop.eup %1081  ;;  %v560_v2 = vadd.f32 1e-05, %v552_v0  ;;  %v545_v3 = vadd.f32 %v537_v59, %v505_v58 }
 0x16c   : > { %v581_v45 = vmul.f32 %v1082_v1, %v1296_v18  ;;  %v573_v4 = vmul.f32 %v1082_v1, %v1293_v17 }
 0x16d   : > { %1087 = vrsqrt.f32 %v560_v2  ;;  %v553_v44 = vmul.f32 0.0625, %v545_v3 }
 0x16e   : > { %1021 = vmatmul.mubr.msk.f32.gmra.mrb[2].mxu1 %vm393_vm0, %v581_v45  ;;  %1035 = vmatmul.mubr.msk.f32.gmra.mrb[2].mxu0 %vm393_vm0, %v573_v4 }
 0x16f   : > { %v1084_v9 = vpop.eup %1083  ;;  %v561_v10 = vadd.f32 1e-05, %v553_v44 }
 0x170   : > { %v582_v5 = vmul.f32 %v1084_v9, %v1309_v29  ;;  %v574_v6 = vmul.f32 %v1084_v9, %v1306_v28 }
 0x171   : > { %1089 = vrsqrt.f32 %v561_v10 }
 0x172   : > { %1023 = vmatprep.mubr.msk.f32.mxu1 %vm393_vm0, %v582_v5  ;;  %1037 = vmatprep.mubr.msk.f32.mxu0 %vm393_vm0, %v574_v6 }
 0x173   : > { %v1086_v18 = vpop.eup %1085 }
 0x174   : > { %v583_v17 = vmul.f32 %v1086_v18, %v1321_v32  ;;  %v575_v7 = vmul.f32 %v1086_v18, %v1318_v43 }
 0x176   : > { %1024 = vmatmul.mubr.msk.f32.gmra.mrb[4].mxu1 %vm393_vm0, %v583_v17  ;;  %1038 = vmatmul.mubr.msk.f32.gmra.mrb[4].mxu0 %vm393_vm0, %v575_v7 }
 0x177   : > { %v1088_v8 = vpop.eup %1087 }
 0x178   : > { %v584_v29 = vmul.f32 %v1088_v8, %v1333_v36  ;;  %v576_v28 = vmul.f32 %v1088_v8, %v1330_v53  ;;  %v991_v36 = vld [vmem:[%s1433_s4] ss:$0 sm:$0xff] }
 0x17a   : > { %1026 = vmatprep.mubr.msk.f32.mxu1 %vm393_vm0, %v584_v29  ;;  %1040 = vmatprep.mubr.msk.f32.mxu0 %vm393_vm0, %v576_v28 }
 0x17b   : > { %v1090_v11 = vpop.eup %1089 }
 0x17c   : > { %v585_v12 = vmul.f32 %v1090_v11, %v1345_v40  ;;  %v577_v32 = vmul.f32 %v1090_v11, %v1342_v41 }
 0x17e   : > { %1027 = vmatmul.mubr.msk.f32.gmra.mrb[6].mxu1 %vm393_vm0, %v585_v12  ;;  %1041 = vmatmul.mubr.msk.f32.gmra.mrb[6].mxu0 %vm393_vm0, %v577_v32 }
 0x239   : > { %v1019_v43 = vpop.f32.mrb[0].mxu1  ;;  %v1033_v53 = vpop.f32.mrb[0].mxu0 }
 0x23a   : > { %v813_v13 = vadd.f32 %v1033_v53, %v1019_v43  ;;  %v678_v14 = vpop.f32.mrb[1].mxu1  ;;  %v807_v40 = vpop.f32.mrb[1].mxu0 }
 0x23b   : > { %v808_v41 = vadd.f32 %v807_v40, %v678_v14 }
 0x23c   : > { %v854_v15 = vadd.f32 %v991_v36, %v813_v13 }
 0x23d   : > { %v853_v16 = vadd.f32 %v991_v36, %v808_v41 }
 0x23e   : > { %862 = vst.msk [vmem:[%s1401_s10 + $0x8] sm:$0xff] %vm393_vm0, %v854_v15 }
 0x23f   : > { %861 = vst.msk [vmem:[%s1401_s10] sm:$0xff] %vm393_vm0, %v853_v16 }
 0x241   : > { %v1022_v19 = vpop.f32.mrb[2].mxu1  ;;  %v1036_v20 = vpop.f32.mrb[2].mxu0 }
 0x242   : > { %v823_v21 = vadd.f32 %v1036_v20, %v1022_v19  ;;  %v688_v22 = vpop.f32.mrb[3].mxu1  ;;  %v817_v23 = vpop.f32.mrb[3].mxu0 }
 0x243   : > { %v818_v24 = vadd.f32 %v817_v23, %v688_v22 }
 0x244   : > { %v856_v25 = vadd.f32 %v991_v36, %v823_v21 }
 0x245   : > { %v855_v26 = vadd.f32 %v991_v36, %v818_v24 }
 0x246   : > { %864 = vst.msk [vmem:[%s1401_s10 + $0x18] sm:$0xff] %vm393_vm0, %v856_v25 }
 0x247   : > { %863 = vst.msk [vmem:[%s1401_s10 + $0x10] sm:$0xff] %vm393_vm0, %v855_v26 }
 0x249   : > { %v1025_v27 = vpop.f32.mrb[4].mxu1  ;;  %v1039_v30 = vpop.f32.mrb[4].mxu0 }
 0x24a   : > { %v833_v31 = vadd.f32 %v1039_v30, %v1025_v27  ;;  %v698_v34 = vpop.f32.mrb[5].mxu1  ;;  %v827_v35 = vpop.f32.mrb[5].mxu0 }
 0x24b   : > { %v828_v38 = vadd.f32 %v827_v35, %v698_v34 }
 0x24c   : > { %v858_v39 = vadd.f32 %v991_v36, %v833_v31 }
 0x24d   : > { %v857_v42 = vadd.f32 %v991_v36, %v828_v38 }
 0x24e   : > { %866 = vst.msk [vmem:[%s1401_s10 + $0x28] sm:$0xff] %vm393_vm0, %v858_v39 }
 0x24f   : > { %865 = vst.msk [vmem:[%s1401_s10 + $0x20] sm:$0xff] %vm393_vm0, %v857_v42 }
 0x251   : > { %v1028_v33 = vpop.f32.mrb[6].mxu1  ;;  %v1042_v46 = vpop.f32.mrb[6].mxu0 }
 0x252   : > { %v843_v47 = vadd.f32 %v1042_v46, %v1028_v33  ;;  %v708_v48 = vpop.f32.mrb[7].mxu1  ;;  %v837_v49 = vpop.f32.mrb[7].mxu0 }
 0x253   : > { %v838_v50 = vadd.f32 %v837_v49, %v708_v48 }
 0x254   : > { %v860_v51 = vadd.f32 %v991_v36, %v843_v47 }
 0x255   : > { %v859_v52 = vadd.f32 %v991_v36, %v838_v50 }
 0x256   : > { %868 = vst.msk [vmem:[%s1401_s10 + $0x38] sm:$0xff] %vm393_vm0, %v860_v51 }
 0x257   : > { %867 = vst.msk [vmem:[%s1401_s10 + $0x30] sm:$0xff] %vm393_vm0, %v859_v52 }
 0x258 PF: > { %p12_p9 = scmp.ge.s32.totalorder %s1162_s22, 4   ;;  %s1436_s18 = smov %s1109_s19 }
 0x259   : > { %s1437_s19 = smov %s1171_s25  ;;  %s1438_s20 = smov %s1162_s22 }
 0x25a   :  { %14 = sbr.rel (!%p12_p9) target bundleno = 2 (0x2), region = 159 }

</bundles_post_ra>
